<compile_context>
chip_gen: v7x
topology: tpu7x:2x2x1
jax: 0.10.0
libtpu: 0.0.40
codegen_flags: <defaults>
</compile_context>

<pallas_src>
import functools

import jax
import jax.numpy as jnp
from jax import lax
from jax.experimental import pallas as pl
from jax.experimental.pallas import tpu as pltpu


def _double_conv_kernel(xp_ref, wt1_ref, b1_ref, wt2_ref, b2_ref, o_ref, *, Rp):
    """Fused (conv3x3 -> BN(folded) -> ReLU) x2 on lane-dense row slabs.

    xp_ref : (M_pad, W*Cin)      padded input rows (1 zero row above/below each image)
    wt1_ref: (3*W*Cin,  W*Cmid)  K-stacked block-Toeplitz weights (BN scale folded), bf16
    b1_ref : (1, W*Cmid)         BN bias tiled across W, f32
    wt2_ref: (3*W*Cmid, W*Cout)  same for conv2
    b2_ref : (1, W*Cout)
    o_ref  : (M_pad, W*Cout)     full padded output slab (pad rows written as zeros)
    """
    M_pad = o_ref.shape[0]
    Mv = M_pad - 2                    # computed rows: padded indices 1 .. M_pad-2
    mxu_dtype = wt1_ref.dtype         # bf16 (or f32)

    # Inter-image pad-row mask via modulo (constant cost, no per-image unroll).
    p = lax.broadcasted_iota(jnp.int32, (Mv, 1), 0) + 1   # padded-row index
    pr = p % Rp
    pad_row = (pr == 0) | (pr == (Rp - 1))

    # ---- conv1: single K-concatenated matmul (3 row taps along K) + bias + ReLU.
    x = xp_ref[...]
    lhs1 = jnp.concatenate(
        [x[0:Mv, :], x[1:Mv + 1, :], x[2:Mv + 2, :]], axis=1).astype(mxu_dtype)
    acc1 = jnp.dot(lhs1, wt1_ref[...], preferred_element_type=jnp.float32)
    mid = jnp.maximum(acc1 + b1_ref[...], 0.0)
    mid = jnp.where(pad_row, 0.0, mid)                     # zero inter-image pad rows

    # Full padded mid slab stays in registers (no VMEM scratch, no offset stores).
    zrow_mid = jnp.zeros((1, mid.shape[1]), jnp.float32)
    mid_slab = jnp.concatenate([zrow_mid, mid, zrow_mid], axis=0)

    # ---- conv2: same structure.
    lhs2 = jnp.concatenate(
        [mid_slab[0:Mv, :], mid_slab[1:Mv + 1, :], mid_slab[2:Mv + 2, :]],
        axis=1).astype(mxu_dtype)
    acc2 = jnp.dot(lhs2, wt2_ref[...], preferred_element_type=jnp.float32)
    out = jnp.maximum(acc2 + b2_ref[...], 0.0)
    out = jnp.where(pad_row, 0.0, out)

    # Full-slab aligned store; pad rows are deterministic zeros (no stale VMEM).
    zrow_out = jnp.zeros((1, out.shape[1]), jnp.float32)
    o_ref[...] = jnp.concatenate([zrow_out, out, zrow_out],
                                 axis=0).astype(o_ref.dtype)


def _toeplitz_weight(w, W):
    """HWIO (3,3,Ci,Co) -> (3*W*Ci, W*Co) K-stacked block-Toeplitz over width.

    wt[dh*W*Ci + w_in*Ci + ci, w_out*Co + co] = w[dh, dw, ci, co] with
    w_in = w_out + dw - 1; out-of-range w_in entries are omitted, which
    implements the width zero-padding.
    """
    kh, kw, ci, co = w.shape
    shifts = jnp.stack([jnp.eye(W, W, k=1 - dw, dtype=w.dtype) for dw in range(kw)])
    t = jnp.einsum('dwv,hdio->hwivo', shifts, w)           # (kh, W, Ci, W, Co)
    return t.reshape(kh * W * ci, W * co)                  # taps stacked along K


def prepare_double_conv_params(w1, g1, be1, m1, v1, w2, g2, be2, m2, v2, *, W,
                               eps=1e-5, mxu_dtype=jnp.bfloat16):
    """Fold inference-mode BN into the conv weights and Toeplitz-lower them.

    Host-side, called ONCE per network (weights are static per forward pass).
    Only a per-channel bias-add + ReLU remains inside the kernel.
    """
    Cmid = w1.shape[-1]
    Cout = w2.shape[-1]
    inv1 = g1 / jnp.sqrt(v1 + eps)
    inv2 = g2 / jnp.sqrt(v2 + eps)
    wt1 = _toeplitz_weight(w1 * inv1, W).astype(mxu_dtype)   # (3*W*Cin,  W*Cmid)
    wt2 = _toeplitz_weight(w2 * inv2, W).astype(mxu_dtype)   # (3*W*Cmid, W*Cout)
    b1 = jnp.tile(be1 - m1 * inv1, W).reshape(1, W * Cmid).astype(jnp.float32)
    b2 = jnp.tile(be2 - m2 * inv2, W).reshape(1, W * Cout).astype(jnp.float32)
    return wt1, b1, wt2, b2


@jax.jit
def double_conv(x_nchw, wt1, b1, wt2, b2):
    """Forward of DoubleConv. x_nchw: (N, Cin, H, W); wt/b from prepare_*()."""
    x = jnp.transpose(x_nchw, (0, 2, 3, 1)).astype(jnp.float32)   # NCHW -> NHWC
    N, H, W, Cin = x.shape
    WCmid = b1.shape[1]
    WCout = b2.shape[1]
    Rp = H + 2
    M_pad = N * Rp

    # Pack the batch into the matmul M dim with one zero pad row above/below each
    # image; each row is the lane-dense flattening of an image row (W*Cin lanes).
    xrows = x.reshape(N, H, W * Cin)
    xpad = jnp.pad(xrows, ((0, 0), (1, 1), (0, 0))).reshape(M_pad, W * Cin)

    kernel = functools.partial(_double_conv_kernel, Rp=Rp)

    out_pad = pl.pallas_call(
        kernel,
        out_shape=jax.ShapeDtypeStruct((M_pad, WCout), jnp.float32),
        grid_spec=pltpu.PrefetchScalarGridSpec(
            num_scalar_prefetch=0,
            grid=(1,),   # whole (tiny) problem in one step; tile rows at real sizes
            in_specs=[
                pl.BlockSpec((M_pad, W * Cin), lambda i: (0, 0)),
                pl.BlockSpec(wt1.shape, lambda i: (0, 0)),
                pl.BlockSpec((1, WCmid), lambda i: (0, 0)),
                pl.BlockSpec(wt2.shape, lambda i: (0, 0)),
                pl.BlockSpec((1, WCout), lambda i: (0, 0)),
            ],
            out_specs=pl.BlockSpec((M_pad, WCout), lambda i: (0, 0)),
        ),
        compiler_params=pltpu.CompilerParams(
            dimension_semantics=("arbitrary",)),
    )(xpad, wt1, b1, wt2, b2)

    # Drop the pad rows and restore NCHW (pure layout glue; at full-UNet scale keep
    # the packed layout between blocks instead).
    Cout = WCout // W
    out = out_pad.reshape(N, Rp, W, Cout)[:, 1:H + 1]
    return jnp.transpose(out, (0, 3, 1, 2))


def _reference(x_nchw, w1, g1, be1, m1, v1, w2, g2, be2, m2, v2, eps=1e-5):
    """Pure-JAX f32 reference (lax conv) for correctness checking."""
    x = jnp.transpose(x_nchw, (0, 2, 3, 1))
    dn = ('NHWC', 'HWIO', 'NHWC')
    y = lax.conv_general_dilated(x, w1, (1, 1), 'SAME', dimension_numbers=dn)
    y = (y - m1) / jnp.sqrt(v1 + eps) * g1 + be1
    y = jnp.maximum(y, 0.0)
    y = lax.conv_general_dilated(y, w2, (1, 1), 'SAME', dimension_numbers=dn)
    y = (y - m2) / jnp.sqrt(v2 + eps) * g2 + be2
    y = jnp.maximum(y, 0.0)
    return jnp.transpose(y, (0, 3, 1, 2))


if __name__ == "__main__":
    key = jax.random.PRNGKey(0)
    ks = jax.random.split(key, 12)

    N, Cin, Cout, H, W = 2, 4, 8, 16, 16
    Cmid = Cout  # mid_channels defaults to out_channels

    # Deterministic synthetic parameters (module __init__ shapes, HWIO weights).
    x = jax.random.normal(ks[0], (N, Cin, H, W), jnp.float32)
    w1 = 0.3 * jax.random.normal(ks[1], (3, 3, Cin, Cmid), jnp.float32)
    g1 = 1.0 + 0.1 * jax.random.normal(ks[2], (Cmid,), jnp.float32)
    be1 = 0.1 * jax.random.normal(ks[3], (Cmid,), jnp.float32)
    m1 = 0.1 * jax.random.normal(ks[4], (Cmid,), jnp.float32)
    v1 = jnp.abs(jax.random.normal(ks[5], (Cmid,), jnp.float32)) + 0.5
    w2 = 0.3 * jax.random.normal(ks[6], (3, 3, Cmid, Cout), jnp.float32)
    g2 = 1.0 + 0.1 * jax.random.normal(ks[7], (Cout,), jnp.float32)
    be2 = 0.1 * jax.random.normal(ks[8], (Cout,), jnp.float32)
    m2 = 0.1 * jax.random.normal(ks[9], (Cout,), jnp.float32)
    v2 = jnp.abs(jax.random.normal(ks[10], (Cout,), jnp.float32)) + 0.5

    # Weight lowering hoisted out of the per-call path (done once per network).
    wt1, b1, wt2, b2 = prepare_double_conv_params(
        w1, g1, be1, m1, v1, w2, g2, be2, m2, v2, W=W, mxu_dtype=jnp.bfloat16)

    out = double_conv(x, wt1, b1, wt2, b2)
    out = jax.block_until_ready(out)

    ref = _reference(x, w1, g1, be1, m1, v1, w2, g2, be2, m2, v2)
    assert out.shape == (N, Cout, H, W), out.shape
    # bf16 weights/activations on the MXU (f32 accumulation): expect ~1e-2 relative
    # error vs. the f32 XLA conv reference; real bugs (flipped taps, bad Toeplitz,
    # pad-row leakage) show up as O(1) relative error.
    max_err = float(jnp.max(jnp.abs(out - ref)))
    denom = float(jnp.max(jnp.abs(ref))) + 1e-6
    rel_err = max_err / denom
    assert rel_err < 5e-2, f"relative error too large: {rel_err} (abs {max_err})"

    print("KERNEL_OK")
</pallas_src>

<mosaic_0001>
module attributes {stable_mosaic.version = 11 : i64} {
  func.func @_double_conv_kernel(%arg0: i32, %arg1: memref<36x64xf32, #tpu.memory_space<vmem>>, %arg2: memref<192x128xbf16, #tpu.memory_space<vmem>>, %arg3: memref<1x128xf32, #tpu.memory_space<vmem>>, %arg4: memref<384x128xbf16, #tpu.memory_space<vmem>>, %arg5: memref<1x128xf32, #tpu.memory_space<vmem>>, %arg6: memref<36x128xf32, #tpu.memory_space<vmem>>) attributes {dimension_semantics = [#tpu.dimension_semantics<arbitrary>], iteration_bounds = array<i64: 1>, scalar_prefetch = 0 : i64, scratch_operands = 0 : i64, tpu.core_type = #tpu.core_type<tc>, window_params = [{pipeline_mode = #tpu.pipeline_mode<synchronous>, transform_indices = @transform_0, window_bounds = array<i64: 36, 64>}, {pipeline_mode = #tpu.pipeline_mode<synchronous>, transform_indices = @transform_1, window_bounds = array<i64: 192, 128>}, {pipeline_mode = #tpu.pipeline_mode<synchronous>, transform_indices = @transform_2, window_bounds = array<i64: 1, 128>}, {pipeline_mode = #tpu.pipeline_mode<synchronous>, transform_indices = @transform_3, window_bounds = array<i64: 384, 128>}, {pipeline_mode = #tpu.pipeline_mode<synchronous>, transform_indices = @transform_4, window_bounds = array<i64: 1, 128>}, {pipeline_mode = #tpu.pipeline_mode<synchronous>, transform_indices = @transform_5, window_bounds = array<i64: 36, 128>}]} {
    %0 = tpu.iota {dimensions = array<i32: 0>} : vector<34x1xi32>
    %c1_i32 = arith.constant 1 : i32
    %1 = vector.broadcast %c1_i32 : i32 to vector<34x1xi32>
    %2 = arith.addi %0, %1 : vector<34x1xi32>
    %c18_i32 = arith.constant 18 : i32
    %c0_i32 = arith.constant 0 : i32
    %3 = arith.cmpi eq, %c18_i32, %c0_i32 : i32
    %c1_i32_0 = arith.constant 1 : i32
    %4 = arith.select %3, %c1_i32_0, %c18_i32 : i32
    %5 = vector.broadcast %4 : i32 to vector<34x1xi32>
    %6 = arith.remsi %2, %5 : vector<34x1xi32>
    %c0_i32_1 = arith.constant 0 : i32
    %7 = vector.broadcast %c0_i32_1 : i32 to vector<34x1xi32>
    %8 = arith.cmpi ne, %6, %7 : vector<34x1xi32>
    %c0_i32_2 = arith.constant 0 : i32
    %9 = vector.broadcast %c0_i32_2 : i32 to vector<34x1xi32>
    %10 = arith.cmpi slt, %6, %9 : vector<34x1xi32>
    %c0_i32_3 = arith.constant 0 : i32
    %11 = arith.cmpi slt, %4, %c0_i32_3 : i32
    %12 = vector.broadcast %11 : i1 to vector<34x1xi1>
    %13 = vector.broadcast %12 : vector<34x1xi1> to vector<34x1xi1>
    %14 = arith.xori %10, %13 : vector<34x1xi1>
    %15 = arith.andi %14, %8 : vector<34x1xi1>
    %16 = vector.broadcast %4 : i32 to vector<34x1xi32>
    %17 = arith.addi %6, %16 : vector<34x1xi32>
    %18 = arith.select %15, %17, %6 : vector<34x1xi1>, vector<34x1xi32>
    %c0_i32_4 = arith.constant 0 : i32
    %19 = vector.broadcast %c0_i32_4 : i32 to vector<34x1xi32>
    %20 = arith.cmpi eq, %18, %19 : vector<34x1xi32>
    %c17_i32 = arith.constant 17 : i32
    %21 = vector.broadcast %c17_i32 : i32 to vector<34x1xi32>
    %22 = arith.cmpi eq, %18, %21 : vector<34x1xi32>
    %23 = arith.ori %20, %22 : vector<34x1xi1>
    %c0 = arith.constant 0 : index
    %c0_5 = arith.constant 0 : index
    %24 = vector.load %arg1[%c0, %c0_5] : memref<36x64xf32, #tpu.memory_space<vmem>>, vector<36x64xf32>
    %25 = vector.extract_strided_slice %24 {offsets = [0, 0], sizes = [34, 64], strides = [1, 1]} : vector<36x64xf32> to vector<34x64xf32>
    %26 = vector.extract_strided_slice %24 {offsets = [1, 0], sizes = [34, 64], strides = [1, 1]} : vector<36x64xf32> to vector<34x64xf32>
    %27 = vector.extract_strided_slice %24 {offsets = [2, 0], sizes = [34, 64], strides = [1, 1]} : vector<36x64xf32> to vector<34x64xf32>
    %28 = tpu.concatenate %25, %26, %27 in 1 : vector<34x64xf32>, vector<34x64xf32>, vector<34x64xf32> -> vector<34x192xf32>
    %29 = arith.truncf %28 : vector<34x192xf32> to vector<34x192xbf16>
    %c0_6 = arith.constant 0 : index
    %c0_7 = arith.constant 0 : index
    %30 = vector.load %arg2[%c0_6, %c0_7] : memref<192x128xbf16, #tpu.memory_space<vmem>>, vector<192x128xbf16>
    %cst = arith.constant dense<0.000000e+00> : vector<34x128xf32>
    %31 = tpu.matmul %29, %30, %cst {dimension_numbers = #tpu.dot_dimension_numbers<[1], [0], [0], [1], [0, 0, 1, 1], [], []>} : vector<34x192xbf16>, vector<192x128xbf16>, vector<34x128xf32> -> vector<34x128xf32>
    %c0_8 = arith.constant 0 : index
    %c0_9 = arith.constant 0 : index
    %32 = vector.load %arg3[%c0_8, %c0_9] : memref<1x128xf32, #tpu.memory_space<vmem>>, vector<1x128xf32>
    %33 = vector.broadcast %32 : vector<1x128xf32> to vector<34x128xf32>
    %34 = arith.addf %31, %33 : vector<34x128xf32>
    %cst_10 = arith.constant 0.000000e+00 : f32
    %35 = vector.broadcast %cst_10 : f32 to vector<34x128xf32>
    %36 = arith.maximumf %34, %35 : vector<34x128xf32>
    %cst_11 = arith.constant 0.000000e+00 : f32
    %37 = vector.shape_cast %23 : vector<34x1xi1> to vector<34x1xi1>
    %38 = vector.broadcast %37 : vector<34x1xi1> to vector<34x128xi1>
    %39 = vector.broadcast %cst_11 : f32 to vector<34x128xf32>
    %40 = arith.select %38, %39, %36 : vector<34x128xi1>, vector<34x128xf32>
    %cst_12 = arith.constant 0.000000e+00 : f32
    %41 = vector.broadcast %cst_12 : f32 to vector<1x128xf32>
    %42 = tpu.concatenate %41, %40, %41 in 0 : vector<1x128xf32>, vector<34x128xf32>, vector<1x128xf32> -> vector<36x128xf32>
    %43 = vector.extract_strided_slice %42 {offsets = [0, 0], sizes = [34, 128], strides = [1, 1]} : vector<36x128xf32> to vector<34x128xf32>
    %44 = vector.extract_strided_slice %42 {offsets = [1, 0], sizes = [34, 128], strides = [1, 1]} : vector<36x128xf32> to vector<34x128xf32>
    %45 = vector.extract_strided_slice %42 {offsets = [2, 0], sizes = [34, 128], strides = [1, 1]} : vector<36x128xf32> to vector<34x128xf32>
    %46 = tpu.concatenate %43, %44, %45 in 1 : vector<34x128xf32>, vector<34x128xf32>, vector<34x128xf32> -> vector<34x384xf32>
    %47 = arith.truncf %46 : vector<34x384xf32> to vector<34x384xbf16>
    %c0_13 = arith.constant 0 : index
    %c0_14 = arith.constant 0 : index
    %48 = vector.load %arg4[%c0_13, %c0_14] : memref<384x128xbf16, #tpu.memory_space<vmem>>, vector<384x128xbf16>
    %cst_15 = arith.constant dense<0.000000e+00> : vector<34x128xf32>
    %49 = tpu.matmul %47, %48, %cst_15 {dimension_numbers = #tpu.dot_dimension_numbers<[1], [0], [0], [1], [0, 0, 1, 1], [], []>} : vector<34x384xbf16>, vector<384x128xbf16>, vector<34x128xf32> -> vector<34x128xf32>
    %c0_16 = arith.constant 0 : index
    %c0_17 = arith.constant 0 : index
    %50 = vector.load %arg5[%c0_16, %c0_17] : memref<1x128xf32, #tpu.memory_space<vmem>>, vector<1x128xf32>
    %51 = vector.broadcast %50 : vector<1x128xf32> to vector<34x128xf32>
    %52 = arith.addf %49, %51 : vector<34x128xf32>
    %cst_18 = arith.constant 0.000000e+00 : f32
    %53 = vector.broadcast %cst_18 : f32 to vector<34x128xf32>
    %54 = arith.maximumf %52, %53 : vector<34x128xf32>
    %cst_19 = arith.constant 0.000000e+00 : f32
    %55 = vector.shape_cast %23 : vector<34x1xi1> to vector<34x1xi1>
    %56 = vector.broadcast %55 : vector<34x1xi1> to vector<34x128xi1>
    %57 = vector.broadcast %cst_19 : f32 to vector<34x128xf32>
    %58 = arith.select %56, %57, %54 : vector<34x128xi1>, vector<34x128xf32>
    %cst_20 = arith.constant 0.000000e+00 : f32
    %59 = vector.broadcast %cst_20 : f32 to vector<1x128xf32>
    %60 = tpu.concatenate %59, %58, %59 in 0 : vector<1x128xf32>, vector<34x128xf32>, vector<1x128xf32> -> vector<36x128xf32>
    %c0_21 = arith.constant 0 : index
    %c0_22 = arith.constant 0 : index
    %61 = vector.load %arg6[%c0_21, %c0_22] : memref<36x128xf32, #tpu.memory_space<vmem>>, vector<36x128xf32>
    tpu.vector_store %arg6[%c0_21, %c0_22], %60 {strides = array<i32>} : memref<36x128xf32, #tpu.memory_space<vmem>>, vector<36x128xf32>,
    return
  }
  func.func @transform_0(%arg0: i32) -> (i32, i32) {
    %c0_i32 = arith.constant 0 : i32
    %c0_i32_0 = arith.constant 0 : i32
    %c0_i32_1 = arith.constant 0 : i32
    return %c0_i32, %c0_i32_0 : i32, i32
  }
  func.func @transform_1(%arg0: i32) -> (i32, i32) {
    %c0_i32 = arith.constant 0 : i32
    %c0_i32_0 = arith.constant 0 : i32
    %c0_i32_1 = arith.constant 0 : i32
    return %c0_i32, %c0_i32_0 : i32, i32
  }
  func.func @transform_2(%arg0: i32) -> (i32, i32) {
    %c0_i32 = arith.constant 0 : i32
    %c0_i32_0 = arith.constant 0 : i32
    %c0_i32_1 = arith.constant 0 : i32
    return %c0_i32, %c0_i32_0 : i32, i32
  }
  func.func @transform_3(%arg0: i32) -> (i32, i32) {
    %c0_i32 = arith.constant 0 : i32
    %c0_i32_0 = arith.constant 0 : i32
    %c0_i32_1 = arith.constant 0 : i32
    return %c0_i32, %c0_i32_0 : i32, i32
  }
  func.func @transform_4(%arg0: i32) -> (i32, i32) {
    %c0_i32 = arith.constant 0 : i32
    %c0_i32_0 = arith.constant 0 : i32
    %c0_i32_1 = arith.constant 0 : i32
    return %c0_i32, %c0_i32_0 : i32, i32
  }
  func.func @transform_5(%arg0: i32) -> (i32, i32) {
    %c0_i32 = arith.constant 0 : i32
    %c0_i32_0 = arith.constant 0 : i32
    %c0_i32_1 = arith.constant 0 : i32
    return %c0_i32, %c0_i32_0 : i32, i32
  }
}

</mosaic_0001>

<bundles_post_ra>
// kernel: double_conv.1
= control target key start
LH: loop header
LB: loop body
LE: loop exit
PB: predicated region body
PF: predicated region fallthrough
CT: control target
= control target key end

     0   :  { %vm137_vm0 = vcmask 1046528   ;;  %v972_v3 = vmov 0   ;;  %vm162_vm1 = vcmask 1045504   ;;  %vm177_vm2 = vcmask 523264   ;;  %s1313_s0 = inlined_call_operand.vmem [shape: f32[36,64], index: 0, kind: input, shape index: {}]   ;;  %s1314_s1 = inlined_call_operand.vmem [shape: bf16[192,128], index: 1, kind: input, shape index: {}]   ;;  %s1315_s3 = inlined_call_operand.vmem [shape: bf16[384,128], index: 3, kind: input, shape index: {}]   ;;  %s1316_s2 = inlined_call_operand.vmem [shape: f32[1,128], index: 2, kind: input, shape index: {}]   ;;  %s1317_s4 = inlined_call_operand.vmem [shape: f32[1,128], index: 4, kind: input, shape index: {}]   ;;  %s1318_s5 = inlined_call_operand.vmem [shape: f32[36,128], index: 5, kind: output, shape index: {}]  }
   0x1   :  { %v1010_v0 = vld [vmem:[%s1313_s0] sm:$0xff]  ;;  %v1015_v1 = vld [vmem:[%s1313_s0 + $0x8] sm:$0xff]  ;;  %v1020_v2 = vld [vmem:[%s1313_s0 + $0x10] sm:$0xff]  ;;  %301 = vmatprep.subr.bf16.mxu0 %v972_v3 }
   0x2   :  { %v138_v4 = vrot.slane %v1010_v0, 1  ;;  %v139_v5 = vrot.slane %v1015_v1, 1  ;;  %v141_v6 = vrot.slane %v1020_v2, 1  ;;  %v1029_v7 = vld [vmem:[%s1313_s0 + $0x18] sm:$0xff]  ;;  %v1034_v8 = vld [vmem:[%s1313_s0 + $0x20] sm:$0xf] }
   0x3   :  { %v143_v9 = vrot.slane %v1029_v7, 1  ;;  %v145_v10 = vrot.slane %v1034_v8, 1  ;;  %v936_v13 = vld [vmem:[%s1314_s1] sm:$0xff]   ;;  %v163_v14 = vrot.slane %v1010_v0, 2  ;;  %s973_s0 = smov 64   ;;  %v164_v18 = vrot.slane %v1015_v1, 2 }
   0x4   :  { %v140_v11 = vsel %vm137_vm0, %v138_v4, %v139_v5  ;;  %v142_v12 = vsel %vm137_vm0, %v139_v5, %v141_v6  ;;  %302 = vmatpush1.bf16.msra.mxu0 %v936_v13  ;;  %v937_v19 = vld [vmem:[%s1314_s1 + $0x8] sm:$0xff]   ;;  %v166_v20 = vrot.slane %v1020_v2, 2  ;;  %v938_v25 = vld [vmem:[%s1314_s1 + $0x10] sm:$0xff]   ;;  %v939_v26 = vld [vmem:[%s1314_s1 + $0x18] sm:$0xff]   ;;  %v168_v41 = vrot.slane %v1029_v7, 2 }
   0x5   :  { %v926_v15 = vpack.i.bf16 %v142_v12, %v140_v11  ;;  %v144_v16 = vsel %vm137_vm0, %v141_v6, %v143_v9  ;;  %v146_v17 = vsel %vm137_vm0, %v143_v9, %v145_v10  ;;  %155 = vrot.lane.b32.xlu1 %v145_v10, %s973_s0  ;;  %303 = vmatprep.subr.bf16.mxu0 %v972_v3  ;;  %v940_v27 = vld [vmem:[%s1314_s1 + $0x20] sm:$0xff]   ;;  %v950_v30 = vld [vmem:[%s1315_s3 + $0x48] sm:$0xff]   ;;  %v952_v32 = vld [vmem:[%s1315_s3 + $0x50] sm:$0xff]   ;;  %v170_v42 = vrot.slane %v1034_v8, 2 }
   0x6   :  { %v931_v21 = vpack.i.bf16 %v146_v17, %v144_v16  ;;  %v165_v22 = vsel %vm162_vm1, %v163_v14, %v164_v18  ;;  %v167_v23 = vsel %vm162_vm1, %v164_v18, %v166_v20  ;;  %v948_v28 = vld [vmem:[%s1315_s3 + $0x40] sm:$0xff]   ;;  %v951_v31 = vld [vmem:[%s1315_s3 + $0x8] sm:$0xff]   ;;  %v953_v34 = vld [vmem:[%s1315_s3 + $0x10] sm:$0xff]   ;;  %v169_v44 = vsel %vm162_vm1, %v166_v20, %v168_v41 }
   0x7   :  { %927 = vrot.lane.b32.xlu0 %v926_v15, %s973_s0  ;;  %v184_v24 = vpack.c.bf16 %v167_v23, %v165_v22  ;;  %v949_v29 = vld [vmem:[%s1315_s3] sm:$0xff]   ;;  %838 = vmatprep.subr.bf16.mxu1 %v948_v28  ;;  %v941_v33 = vld [vmem:[%s1314_s1 + $0x28] sm:$0xff]   ;;  %v942_v35 = vld [vmem:[%s1314_s1 + $0x30] sm:$0xff]   ;;  %v171_v45 = vsel %vm162_vm1, %v168_v41, %v170_v42  ;;  %v188_v58 = vpack.c.bf16 %v170_v42, %v170_v42  ;;  %v21_v9 = vlaneseq }
   0x8   :  { %304 = vmatpush1.bf16.msra.mxu0 %v937_v19  ;;  %839 = vmatpush3.bf16.msra.mxu1 %v949_v29  ;;  %v943_v36 = vld [vmem:[%s1314_s1 + $0x38] sm:$0xff]   ;;  %v944_v37 = vld [vmem:[%s1314_s1 + $0x40] sm:$0xff]   ;;  %v945_v38 = vld [vmem:[%s1314_s1 + $0x48] sm:$0xff]   ;;  %v186_v50 = vpack.c.bf16 %v171_v45, %v169_v44 }
   0x9   :  { %305 = vmatprep.subr.bf16.mxu0 %v972_v3  ;;  %803 = vmatprep.mubr.msk.bf16.mxu0 %vm177_vm2, %v184_v24  ;;  %v946_v39 = vld [vmem:[%s1314_s1 + $0x50] sm:$0xff]   ;;  %v947_v40 = vld [vmem:[%s1314_s1 + $0x58] sm:$0xff]   ;;  %v22_v10 = vshrl.u32 %v21_v9, 7 }
   0xa   :  { %840 = vmatprep.subr.bf16.mxu1 %v950_v30  ;;  %v954_v62 = vld [vmem:[%s1315_s3 + $0x58] sm:$0xff]   ;;  %v960_v4 = vld [vmem:[%s1315_s3 + $0x70] sm:$0xff]  }
   0xb   :  { %932 = vrot.lane.b32.xlu0 %v931_v21, %s973_s0  ;;  %v955_v63 = vld [vmem:[%s1315_s3 + $0x18] sm:$0xff]   ;;  %v961_v5 = vld [vmem:[%s1315_s3 + $0x30] sm:$0xff]   ;;  %v23_v11 = vadd.s32 8, %v22_v10  ;;  %v27_v12 = vadd.s32 1, %v22_v10  ;;  %v24_v16 = vadd.s32 16, %v22_v10  ;;  %v25_v19 = vadd.s32 24, %v22_v10 }
   0xc   :  { %306 = vmatpush1.bf16.msra.mxu0 %v938_v25  ;;  %841 = vmatpush3.bf16.msra.mxu1 %v951_v31  ;;  %v962_v6 = vld [vmem:[%s1315_s3 + $0x78] sm:$0xff]   ;;  %v26_v25 = vadd.s32 32, %v22_v10 }
   0xd   :  { %307 = vmatprep.subr.bf16.mxu0 %v972_v3  ;;  %842 = vmatprep.subr.bf16.mxu1 %v952_v32  ;;  %v28_v13 = vadd.s32 1, %v23_v11  ;;  %v1160_v14 = vmul.u32.u64.low 3817748708, %v27_v12  ;;  %v1161_v15 = vmul.u32.u64.high 3817748708, %v27_v12, %v1160_v14  ;;  %v29_v20 = vadd.s32 1, %v24_v16 }
   0xe   :  { %v30_v21 = vadd.s32 1, %v25_v19  ;;  %v31_v30 = vadd.s32 1, %v26_v25 }
   0xf   :  { %v1163_v17 = vmul.u32.u64.low 3817748708, %v28_v13  ;;  %v1164_v18 = vmul.u32.u64.high 3817748708, %v28_v13, %v1163_v17  ;;  %v38_v22 = vshrl.u32 %v1161_v15, 4 }
  0x10   :  { %308 = vmatpush1.bf16.msra.mxu0 %v939_v26  ;;  %843 = vmatpush3.bf16.msra.mxu1 %v953_v34  ;;  %v1167_v23 = vmul.u32.u64.low 3817748708, %v29_v20  ;;  %v1168_v24 = vmul.u32.u64.high 3817748708, %v29_v20, %v1167_v23 }
  0x11   :  { %309 = vmatprep.subr.bf16.mxu0 %v972_v3  ;;  %844 = vmatprep.subr.bf16.mxu1 %v954_v62  ;;  %v49_v26 = vshrl.u32 %v1164_v18, 4  ;;  %v39_v29 = vmul.u32 18, %v38_v22 }
  0x13   :  { %v50_v31 = vmul.u32 18, %v49_v26  ;;  %v40_v32 = vsub.s32 %v27_v12, %v39_v29 }
  0x14   :  { %310 = vmatpush1.bf16.msra.mxu0 %v940_v27  ;;  %845 = vmatpush3.bf16.msra.mxu1 %v955_v63  ;;  %v1171_v27 = vmul.u32.u64.low 3817748708, %v30_v21  ;;  %v1172_v28 = vmul.u32.u64.high 3817748708, %v30_v21, %v1171_v27 }
  0x15   :  { %311 = vmatprep.subr.bf16.mxu0 %v972_v3  ;;  %vm87_vm3 = vcmp.ne.s32.totalorder %v40_v32, 0  ;;  %vm92_vm4 = vcmp.lt.s32.totalorder %v40_v32, 0 }
  0x16   :  { %vm97_vm7 = vmand %vm92_vm4, %vm87_vm3 }
  0x18   :  { %312 = vmatpush1.bf16.msra.mxu0 %v941_v33  ;;  %v60_v33 = vshrl.u32 %v1168_v24, 4 }
  0x19   :  { %313 = vmatprep.subr.bf16.mxu0 %v972_v3 }
  0x1c   :  { %314 = vmatpush1.bf16.msra.mxu0 %v942_v35  ;;  %v1175_v34 = vmul.u32.u64.low 3817748708, %v31_v30  ;;  %v1176_v35 = vmul.u32.u64.high 3817748708, %v31_v30, %v1175_v34 }
  0x1d   :  { %315 = vmatprep.subr.bf16.mxu0 %v972_v3 }
  0x20   :  { %316 = vmatpush1.bf16.msra.mxu0 %v943_v36  ;;  %v51_v36 = vsub.s32 %v28_v13, %v50_v31 }
  0x21   :  { %317 = vmatprep.subr.bf16.mxu0 %v972_v3 }
  0x22   :  { %vm88_vm5 = vcmp.ne.s32.totalorder %v51_v36, 0  ;;  %vm93_vm6 = vcmp.lt.s32.totalorder %v51_v36, 0  ;;  %v103_v41 = vadd.s32 18, %v51_v36 }
  0x23   :  { %vm98_vm8 = vmand %vm93_vm6, %vm88_vm5 }
  0x24   :  { %318 = vmatpush1.bf16.msra.mxu0 %v944_v37  ;;  %v71_v37 = vshrl.u32 %v1172_v28, 4 }
  0x25   :  { %319 = vmatprep.subr.bf16.mxu0 %v972_v3 }
  0x28   :  { %320 = vmatpush1.bf16.msra.mxu0 %v945_v38  ;;  %v61_v38 = vmul.u32 18, %v60_v33 }
  0x29   :  { %321 = vmatprep.subr.bf16.mxu0 %v972_v3 }
  0x2a   :  { %v62_v42 = vsub.s32 %v29_v20, %v61_v38 }
  0x2c   :  { %322 = vmatpush1.bf16.msra.mxu0 %v946_v39  ;;  %v102_v39 = vadd.s32 18, %v40_v32  ;;  %vm89_vm9 = vcmp.ne.s32.totalorder %v62_v42, 0  ;;  %vm94_vm10 = vcmp.lt.s32.totalorder %v62_v42, 0 }
  0x2d   :  { %323 = vmatprep.subr.bf16.mxu0 %v972_v3  ;;  %v959_v3 = vld [vmem:[%s1315_s3 + $0x28] sm:$0xff]   ;;  %vm99_vm3 = vmand %vm94_vm10, %vm89_vm9 }
  0x2e   :  { %v107_v44 = vsel %vm97_vm7, %v102_v39, %v40_v32  ;;  %vm382_vm7 = vcmask 1040384  }
  0x2f   :  { %vm112_vm11 = vcmp.eq.s32.totalorder %v107_v44, 0  ;;  %vm117_vm12 = vcmp.eq.s32.totalorder %v107_v44, 17 }
  0x30   :  { %324 = vmatpush1.bf16.msra.mxu0 %v947_v40  ;;  %v72_v40 = vmul.u32 18, %v71_v37  ;;  %vm1186_vm4 = vmor %vm112_vm11, %vm117_vm12 }
  0x32   :  { %v73_v45 = vsub.s32 %v30_v21, %v72_v40 }
  0x34   :  { %vm90_vm13 = vcmp.ne.s32.totalorder %v73_v45, 0  ;;  %vm95_vm14 = vcmp.lt.s32.totalorder %v73_v45, 0 }
  0x35   :  { %vm100_vm5 = vmand %vm95_vm14, %vm90_vm13 }
  0x77   :  { %v156_v59 = vpop.permute.xlu1 %155 }
  0x78   :  { %v182_v60 = vsel %vm177_vm2, %v1034_v8, %v156_v59  ;;  %v974_v8 = vmov 0.0  }
  0x79   :  { %v928_v43 = vpop.permute.xlu0 %927  ;;  %v187_v61 = vpack.c.bf16 %v182_v60, %v182_v60 }
  0x7a   :  { %v930_v46 = vunpack.i.h.bf16 %v928_v43  ;;  %v929_v47 = vunpack.i.l.bf16 %v928_v43  ;;  %v82_v43 = vshrl.u32 %v1176_v35, 4 }
  0x7c   :  { %v178_v48 = vsel %vm177_vm2, %v1010_v0, %v929_v47  ;;  %v179_v49 = vsel %vm177_vm2, %v1015_v1, %v930_v46  ;;  %v956_v0 = vld [vmem:[%s1315_s3 + $0x60] sm:$0xff]   ;;  %v108_v47 = vsel %vm98_vm8, %v103_v41, %v51_v36 }
  0x7d   :  { %v183_v51 = vpack.c.bf16 %v179_v49, %v178_v48  ;;  %v933_v52 = vpop.permute.xlu0 %932  ;;  %v957_v1 = vld [vmem:[%s1315_s3 + $0x20] sm:$0xff]   ;;  %846 = vmatprep.subr.bf16.mxu1 %v956_v0  ;;  %v83_v48 = vmul.u32 18, %v82_v43  ;;  %vm113_vm15 = vcmp.eq.s32.totalorder %v108_v47, 0 }
  0x7e   :  { %v935_v53 = vunpack.i.h.bf16 %v933_v52  ;;  %v934_v54 = vunpack.i.l.bf16 %v933_v52  ;;  %847 = vmatpush3.bf16.msra.mxu1 %v957_v1  ;;  %v1183_v46 = vld [vmem:[%s1316_s2] ss:$0 sm:$0xff] }
  0x7f   :  { %334 = vmatmul.mubr.bf16.vlgmr.msra.gmra.mrb[0].mxu0 %v183_v51 }
  0x80   :  { %804 = vmatprep.mubr.msk.bf16.mxu0 %vm177_vm2, %v186_v50  ;;  %v180_v55 = vsel %vm177_vm2, %v1020_v2, %v934_v54  ;;  %v181_v56 = vsel %vm177_vm2, %v1029_v7, %v935_v53  ;;  %v958_v2 = vld [vmem:[%s1315_s3 + $0x68] sm:$0xff]   ;;  %v963_v7 = vld [vmem:[%s1315_s3 + $0x38] sm:$0xff]   ;;  %v104_v50 = vadd.s32 18, %v62_v42 }
  0x81   :  { %v185_v57 = vpack.c.bf16 %v181_v56, %v180_v55  ;;  %848 = vmatprep.subr.bf16.mxu1 %v958_v2  ;;  %v105_v55 = vadd.s32 18, %v73_v45  ;;  %v84_v56 = vsub.s32 %v31_v30, %v83_v48 }
  0x82   :  { %849 = vmatpush3.bf16.msra.mxu1 %v959_v3 }
  0x83   :  { %850 = vmatprep.subr.bf16.mxu1 %v960_v4  ;;  %v110_v1 = vsel %vm100_vm5, %v105_v55, %v73_v45  ;;  %vm91_vm8 = vcmp.ne.s32.totalorder %v84_v56, 0  ;;  %vm96_vm9 = vcmp.lt.s32.totalorder %v84_v56, 0  ;;  %v964_v45 = vld [vmem:[%s1315_s3 + $0x80] sm:$0xff]   ;;  %v965_v55 = vld [vmem:[%s1315_s3 + $0x88] sm:$0xff]  }
  0x84   :  { %vm115_vm12 = vcmp.eq.s32.totalorder %v110_v1, 0  ;;  %vm120_vm13 = vcmp.eq.s32.totalorder %v110_v1, 17  ;;  %vm101_vm14 = vmand %vm96_vm9, %vm91_vm8 }
  0x85   :  { %vm831_vm8 = vmneg %vm382_vm7 }
  0x86   :  { %851 = vmatpush3.bf16.msra.mxu1 %v961_v5  ;;  %v106_v5 = vadd.s32 18, %v84_v56 }
  0x87   :  { %342 = vmatmul.mubr.bf16.gmra.mrb[4].mxu0 %v185_v57  ;;  %852 = vmatprep.subr.bf16.mxu1 %v962_v6 }
  0x88   :  { %805 = vmatprep.mubr.msk.bf16.mxu0 %vm177_vm2, %v188_v58  ;;  %vm118_vm2 = vcmp.eq.s32.totalorder %v108_v47, 17  ;;  %v111_v21 = vsel %vm101_vm14, %v106_v5, %v84_v56  ;;  %v969_v5 = vld [vmem:[%s1315_s3 + $0xa8] sm:$0xff]  }
  0x89   :  { %vm1191_vm6 = vmor %vm113_vm15, %vm118_vm2  ;;  %vm121_vm5 = vcmp.eq.s32.totalorder %v111_v21, 17 }
  0x8a   :  { %853 = vmatpush3.bf16.msra.mxu1 %v963_v7  ;;  %vm1211_vm2 = vmor %vm115_vm12, %vm120_vm13  ;;  %vm398_vm12 = vcmask 1042432  }
  0x8b   :  { %883 = vmatprep.subr.bf16.mxu1 %v974_v8 }
  0x8f   :  { %350 = vmatmul.mubr.bf16.gmra.mrb[8].mxu0 %v187_v61  ;;  %v109_v61 = vsel %vm99_vm3, %v104_v50, %v62_v42  ;;  %vm116_vm3 = vcmp.eq.s32.totalorder %v111_v21, 0 }
  0x90   :  { %vm114_vm10 = vcmp.eq.s32.totalorder %v109_v61, 0  ;;  %vm119_vm11 = vcmp.eq.s32.totalorder %v109_v61, 17  ;;  %vm1228_vm9 = vmor %vm116_vm3, %vm121_vm5  ;;  %v966_v61 = vld [vmem:[%s1315_s3 + $0x90] sm:$0xff]  }
  0x91   :  { %vm1204_vm15 = vmor %vm114_vm10, %vm119_vm11  ;;  %vm975_vm10 = vmmov 1  }
  0x92   :  { %vm832_vm11 = vmpackc.low %vm975_vm10, %vm831_vm8 }
 0x152   :  { %v335_v49 = vpop.f32.mrb[0].mxu0 }
 0x153   :  { %v336_v51 = vadd.f32 %v1183_v46, %v335_v49  ;;  %v337_v52 = vpop.f32.mrb[1].mxu0 }
 0x154   :  { %v338_v54 = vpop.f32.mrb[2].mxu0 }
 0x155   :  { %v357_v57 = vmax.f32 %v336_v51, 0.0  ;;  %v339_v58 = vadd.f32 %v1183_v46, %v338_v54  ;;  %v340_v59 = vpop.f32.mrb[3].mxu0 }
 0x157   :  { %v372_v62 = vsel %vm1186_vm4, 0.0, %v357_v57  ;;  %v358_v63 = vmax.f32 %v339_v58, 0.0 }
 0x158   :  { %v1197_v0 = vrot.slane %v372_v62, 7 }
 0x159   :  { %v373_v2 = vsel %vm1191_vm6, 0.0, %v358_v63 }
 0x15a   :  { %v384_v3 = vrot.slane %v373_v2, 7  ;;  %v343_v4 = vpop.f32.mrb[4].mxu0  ;;  %v397_v6 = vsel %vm382_vm7, 0.0, %v1197_v0  ;;  %v967_v2 = vld [vmem:[%s1315_s3 + $0x98] sm:$0xff]  }
 0x15b   :  { %v344_v7 = vadd.f32 %v1183_v46, %v343_v4  ;;  %v345_v9 = vpop.f32.mrb[5].mxu0  ;;  %v402_v13 = vrot.slane %v397_v6, 1  ;;  %v416_v14 = vrot.slane %v397_v6, 2  ;;  %v970_v6 = vld [vmem:[%s1315_s3 + $0xb0] sm:$0xff]  }
 0x15c   :  { %v346_v11 = vpop.f32.mrb[6].mxu0  ;;  %v385_v12 = vsel %vm382_vm7, %v1197_v0, %v384_v3 }
 0x15d   :  { %v359_v15 = vmax.f32 %v344_v7, 0.0  ;;  %v347_v16 = vadd.f32 %v1183_v46, %v346_v11  ;;  %v348_v17 = vpop.f32.mrb[7].mxu0  ;;  %v403_v18 = vrot.slane %v385_v12, 1  ;;  %v417_v19 = vrot.slane %v385_v12, 2  ;;  %v971_v7 = vld [vmem:[%s1315_s3 + $0xb8] sm:$0xff]  }
 0x15e   :  { %v833_v22 = vpack.c.bf16 %v385_v12, %v1197_v0 }
 0x15f   :  { %v374_v23 = vsel %vm1204_vm15, 0.0, %v359_v15  ;;  %v360_v24 = vmax.f32 %v347_v16, 0.0  ;;  %v404_v25 = vsel %vm137_vm0, %v402_v13, %v403_v18  ;;  %v1220_v26 = vsel %vm162_vm1, %v416_v14, %v417_v19 }
 0x160   :  { %v386_v27 = vrot.slane %v374_v23, 7 }
 0x161   :  { %v375_v28 = vsel %vm1211_vm2, 0.0, %v360_v24 }
 0x162   :  { %v388_v29 = vrot.slane %v375_v28, 7  ;;  %v351_v30 = vpop.f32.mrb[8].mxu0  ;;  %v387_v31 = vsel %vm382_vm7, %v384_v3, %v386_v27  ;;  %v968_v3 = vld [vmem:[%s1315_s3 + $0xa0] sm:$0xff]  }
 0x163   :  { %v352_v32 = vadd.f32 %v1183_v46, %v351_v30  ;;  %v353_v33 = vpop.f32.mrb[9].mxu0  ;;  %v405_v34 = vrot.slane %v387_v31, 1  ;;  %v419_v35 = vrot.slane %v387_v31, 2 }
 0x164   :  { %v389_v36 = vsel %vm382_vm7, %v386_v27, %v388_v29  ;;  %v354_v38 = vpop.f32.mrb[10].mxu0 }
 0x165   :  { %v361_v39 = vmax.f32 %v352_v32, 0.0  ;;  %v355_v40 = vpop.f32.mrb[11].mxu0  ;;  %v406_v41 = vsel %vm137_vm0, %v403_v18, %v405_v34  ;;  %v407_v42 = vrot.slane %v389_v36, 1  ;;  %v433_v43 = vpack.c.bf16 %v389_v36, %v387_v31 }
 0x166   :  { %v431_v44 = vpack.c.bf16 %v406_v41, %v404_v25  ;;  %v420_v46 = vsel %vm162_vm1, %v417_v19, %v419_v35  ;;  %v421_v47 = vrot.slane %v389_v36, 2 }
 0x167   :  { %v376_v48 = vsel %vm1228_vm9, 0.0, %v361_v39  ;;  %v408_v49 = vsel %vm137_vm0, %v405_v34, %v407_v42  ;;  %v432_v50 = vpack.c.bf16 %v420_v46, %v1220_v26 }
 0x168   :  { %v390_v51 = vrot.slane %v376_v48, 7  ;;  %670 = vmatprep.mubr.bf16.mxu1 %v431_v44  ;;  %v422_v52 = vsel %vm162_vm1, %v419_v35, %v421_v47 }
 0x169   :  { %834 = vmatmul.mubr.msk.bf16.vlgmr.msra.gmra.mrb[0].mxu1 %vm832_vm11, %v833_v22 }
 0x16a   :  { %v391_v54 = vsel %vm382_vm7, %v388_v29, %v390_v51  ;;  %884 = vmatpush3.bf16.msra.mxu1 %v964_v45 }
 0x16b   :  { %v399_v56 = vsel %vm398_vm12, %v391_v54, 0.0  ;;  %885 = vmatprep.subr.bf16.mxu1 %v974_v8  ;;  %v836_v4 = vpack.c.bf16 %v391_v54, %v391_v54 }
 0x16c   :  { %v409_v57 = vrot.slane %v399_v56, 1  ;;  %v423_v58 = vrot.slane %v399_v56, 2 }
 0x16e   :  { %886 = vmatpush3.bf16.msra.mxu1 %v965_v55  ;;  %v410_v59 = vsel %vm137_vm0, %v407_v42, %v409_v57  ;;  %v424_v62 = vsel %vm162_vm1, %v421_v47, %v423_v58  ;;  %v437_v1 = vpack.c.bf16 %v409_v57, %v409_v57  ;;  %vm835_vm0 = vmpackc.low %vm398_vm12, %vm398_vm12  ;;  %vm976_vm1 = vmmov 0  }
 0x16f   :  { %887 = vmatprep.subr.bf16.mxu1 %v974_v8  ;;  %v434_v63 = vpack.c.bf16 %v410_v59, %v408_v49  ;;  %v435_v0 = vpack.c.bf16 %v424_v62, %v422_v52  ;;  %v438_v9 = vpack.c.bf16 %v423_v58, %v423_v58 }
 0x171   :  { %678 = vmatprep.mubr.bf16.mxu1 %v434_v63 }
 0x172   :  { %888 = vmatpush3.bf16.msra.mxu1 %v966_v61 }
 0x173   :  { %679 = vmatmul.mubr.bf16.gmra.mrb[4].mxu1 %v433_v43  ;;  %889 = vmatprep.subr.bf16.mxu1 %v974_v8 }
 0x174   :  { %686 = vmatprep.mubr.bf16.mxu1 %v437_v1 }
 0x176   :  { %890 = vmatpush3.bf16.msra.mxu1 %v967_v2 }
 0x177   :  { %891 = vmatprep.subr.bf16.mxu1 %v974_v8 }
 0x17a   :  { %892 = vmatpush3.bf16.msra.mxu1 %v968_v3 }
 0x17b   :  { %837 = vmatmul.mubr.msk.bf16.gmra.mrb[8].mxu1 %vm835_vm0, %v836_v4  ;;  %893 = vmatprep.subr.bf16.mxu1 %v974_v8 }
 0x17c   :  { %899 = vmatprep.mubr.msk.bf16.mxu1 %vm976_vm1, %v974_v8 }
 0x17e   :  { %894 = vmatpush3.bf16.msra.mxu1 %v969_v5 }
 0x17f   :  { %895 = vmatprep.subr.bf16.mxu1 %v974_v8 }
 0x182   :  { %896 = vmatpush3.bf16.msra.mxu1 %v970_v6 }
 0x183   :  { %897 = vmatprep.subr.bf16.mxu1 %v974_v8 }
 0x186   :  { %898 = vmatpush3.bf16.msra.mxu1 %v971_v7 }
 0x189   :  { %900 = vmatmul.mubr.bf16.vlgmr.msra.gmra.mrb[12].mxu1 %v432_v50 }
 0x18a   :  { %903 = vmatprep.mubr.msk.bf16.mxu1 %vm976_vm1, %v974_v8 }
 0x191   :  { %904 = vmatmul.mubr.bf16.gmra.mrb[16].mxu1 %v435_v0 }
 0x192   :  { %907 = vmatprep.mubr.msk.bf16.mxu1 %vm976_vm1, %v974_v8  ;;  %v806_v8 = vld [vmem:[%s1317_s4] ss:$0 sm:$0xff] }
 0x199   :  { %908 = vmatmul.mubr.bf16.gmra.mrb[20].mxu1 %v438_v9 }
 0x23c   :  { %v854_v11 = vpop.f32.mrb[0].mxu1 }
 0x23d   :  { %v855_v12 = vpop.f32.mrb[1].mxu1 }
 0x23e   :  { %v856_v13 = vadd.f32 %v855_v12, %v854_v11  ;;  %v857_v14 = vpop.f32.mrb[2].mxu1 }
 0x23f   :  { %v858_v15 = vpop.f32.mrb[3].mxu1 }
 0x240   :  { %v859_v16 = vadd.f32 %v858_v15, %v857_v14  ;;  %v673_v29 = vadd.f32 %v856_v13, %v806_v8 }
 0x242   :  { %v676_v33 = vadd.f32 %v859_v16, %v806_v8 }
 0x246   :  { %v860_v17 = vpop.f32.mrb[4].mxu1 }
 0x247   :  { %v861_v18 = vpop.f32.mrb[5].mxu1 }
 0x248   :  { %v862_v19 = vadd.f32 %v861_v18, %v860_v17  ;;  %v863_v21 = vpop.f32.mrb[6].mxu1 }
 0x249   :  { %v864_v22 = vpop.f32.mrb[7].mxu1 }
 0x24a   :  { %v865_v23 = vadd.f32 %v864_v22, %v863_v21  ;;  %v681_v43 = vadd.f32 %v862_v19, %v806_v8 }
 0x24c   :  { %v684_v49 = vadd.f32 %v865_v23, %v806_v8 }
 0x24e   :  { %v866_v24 = vpop.f32.mrb[8].mxu1 }
 0x24f   :  { %v867_v25 = vpop.f32.mrb[9].mxu1 }
 0x250   :  { %v868_v26 = vadd.f32 %v867_v25, %v866_v24  ;;  %v869_v27 = vpop.f32.mrb[10].mxu1 }
 0x251   :  { %v870_v28 = vpop.f32.mrb[11].mxu1 }
 0x252   :  { %v689_v58 = vadd.f32 %v868_v26, %v806_v8 }
 0x25c   :  { %v728_v30 = vpop.f32.mrb[12].mxu1 }
 0x25d   :  { %v729_v31 = vadd.f32 %v728_v30, %v673_v29  ;;  %v901_v32 = vpop.f32.mrb[13].mxu1 }
 0x25e   :  { %v731_v34 = vpop.f32.mrb[14].mxu1 }
 0x25f   :  { %v750_v35 = vmax.f32 %v729_v31, 0.0  ;;  %v732_v36 = vadd.f32 %v731_v34, %v676_v33  ;;  %v902_v38 = vpop.f32.mrb[15].mxu1 }
 0x261   :  { %v755_v39 = vsel %vm1186_vm4, 0.0, %v750_v35  ;;  %v751_v40 = vmax.f32 %v732_v36, 0.0 }
 0x262   :  { %v765_v41 = vrot.slane %v755_v39, 7 }
 0x263   :  { %v756_v42 = vsel %vm1191_vm6, 0.0, %v751_v40 }
 0x264   :  { %v779_v44 = vsel %vm382_vm7, 0.0, %v765_v41  ;;  %v766_v45 = vrot.slane %v756_v42, 7  ;;  %v736_v46 = vpop.f32.mrb[16].mxu1 }
 0x265   :  { %781 = vst [vmem:[%s1318_s5] sm:$0xff] %v779_v44  ;;  %v737_v47 = vadd.f32 %v736_v46, %v681_v43  ;;  %v905_v48 = vpop.f32.mrb[17].mxu1 }
 0x266   :  { %v767_v53 = vsel %vm382_vm7, %v765_v41, %v766_v45  ;;  %v739_v50 = vpop.f32.mrb[18].mxu1 }
 0x267   :  { %782 = vst [vmem:[%s1318_s5 + $0x8] sm:$0xff] %v767_v53  ;;  %v752_v60 = vmax.f32 %v737_v47, 0.0  ;;  %v740_v51 = vadd.f32 %v739_v50, %v684_v49  ;;  %v906_v52 = vpop.f32.mrb[19].mxu1 }
 0x269   :  { %v757_v54 = vsel %vm1204_vm15, 0.0, %v752_v60  ;;  %v753_v55 = vmax.f32 %v740_v51, 0.0 }
 0x26a   :  { %v768_v56 = vrot.slane %v757_v54, 7 }
 0x26b   :  { %v758_v57 = vsel %vm1211_vm2, 0.0, %v753_v55 }
 0x26c   :  { %v769_v59 = vsel %vm382_vm7, %v766_v45, %v768_v56  ;;  %v770_v61 = vrot.slane %v758_v57, 7  ;;  %v744_v62 = vpop.f32.mrb[20].mxu1 }
 0x26d   :  { %783 = vst [vmem:[%s1318_s5 + $0x10] sm:$0xff] %v769_v59  ;;  %v745_v63 = vadd.f32 %v744_v62, %v689_v58  ;;  %v909_v0 = vpop.f32.mrb[21].mxu1 }
 0x26e   :  { %v771_v1 = vsel %vm382_vm7, %v768_v56, %v770_v61  ;;  %v747_v10 = vpop.f32.mrb[22].mxu1 }
 0x26f   :  { %784 = vst [vmem:[%s1318_s5 + $0x18] sm:$0xff] %v771_v1  ;;  %v754_v20 = vmax.f32 %v745_v63, 0.0  ;;  %v910_v2 = vpop.f32.mrb[23].mxu1 }
 0x271   :  { %v759_v3 = vsel %vm1228_vm9, 0.0, %v754_v20 }
 0x272   :  { %v772_v4 = vrot.slane %v759_v3, 7 }
 0x274   :  { %v773_v5 = vsel %vm382_vm7, %v770_v61, %v772_v4 }
 0x275   :  { %v780_v6 = vsel %vm398_vm12, %v773_v5, 0.0 }
 0x276   :  { %785 = vst [vmem:[%s1318_s5 + $0x20] sm:$0xf] %v780_v6 }

</bundles_post_ra>
